<compile_context>
chip_gen: v5e
topology: v5e:2x2
jax: 0.10.0
libtpu: 0.0.40
codegen_flags: <defaults>
</compile_context>

<pallas_src>
import jax
import jax.numpy as jnp
from jax.experimental import pallas as pl
from jax.experimental.pallas import tpu as pltpu


def _awl_kernel(packed_ref, out_ref):
    # packed_ref: (2, num) f32 in VMEM; row 0 = losses, row 1 = params.
    # out_ref:    (1,) f32 in SMEM (scalar result).
    l = packed_ref[0:1, :]                          # (1, num) static slice (view, no copy)
    p = packed_ref[1:2, :]                          # (1, num)
    inv_p2 = pl.reciprocal(p * p, approx=False)     # exact 1/(p*p)
    terms = l * inv_p2 + jnp.log(p + 1.0)           # matches torch: log(params + 1)
    out_ref[0] = jnp.sum(terms)                     # cross-lane reduce -> scalar SMEM store


def automatic_weighted_loss(losses, params):
    """losses: (num,) f32 scalar task losses; params: (num,) learnable weights."""
    packed = jnp.stack(
        [losses.astype(jnp.float32), params.astype(jnp.float32)], axis=0
    )  # (2, num): one input DMA instead of two

    out = pl.pallas_call(
        _awl_kernel,
        out_shape=jax.ShapeDtypeStruct((1,), jnp.float32),
        in_specs=[pl.BlockSpec(memory_space=pltpu.MemorySpace.VMEM)],  # whole (2, num) block
        out_specs=pl.BlockSpec(memory_space=pltpu.MemorySpace.SMEM),   # scalar via SMEM
    )(packed)
    return out[0]


def reference(losses, params):
    return jnp.sum(losses / (params * params) + jnp.log(params + 1.0))


if __name__ == "__main__":
    num = 3
    # Deterministic parameter init matching torch: params = ones(num)
    params = jnp.ones((num,), dtype=jnp.float32)

    # Deterministic synthetic positive scalar task losses.
    key = jax.random.PRNGKey(0)
    losses = jax.random.uniform(key, (num,), dtype=jnp.float32, minval=0.1, maxval=3.0)

    out = automatic_weighted_loss(losses, params)
    out = jax.block_until_ready(out)

    ref = reference(losses, params)
    assert jnp.allclose(out, ref, rtol=1e-5, atol=1e-5), (out, ref)
    print("KERNEL_OK")
</pallas_src>

<mosaic_0001>
module attributes {stable_mosaic.version = 11 : i64} {
  func.func @_awl_kernel(%arg0: memref<2x3xf32, #tpu.memory_space<vmem>>, %arg1: memref<1xf32, #tpu.memory_space<smem>>) attributes {dimension_semantics = [], scalar_prefetch = 0 : i64, scratch_operands = 0 : i64, tpu.core_type = #tpu.core_type<tc>} {
    %c0 = arith.constant 0 : index
    %c0_0 = arith.constant 0 : index
    %0 = vector.load %arg0[%c0, %c0_0] : memref<2x3xf32, #tpu.memory_space<vmem>>, vector<1x3xf32>
    %c1 = arith.constant 1 : index
    %c0_1 = arith.constant 0 : index
    %1 = vector.load %arg0[%c1, %c0_1] : memref<2x3xf32, #tpu.memory_space<vmem>>, vector<1x3xf32>
    %2 = arith.mulf %1, %1 : vector<1x3xf32>
    %3 = tpu.reciprocal %2 : vector<1x3xf32> -> vector<1x3xf32>
    %4 = arith.mulf %0, %3 : vector<1x3xf32>
    %cst = arith.constant 1.000000e+00 : f32
    %5 = vector.broadcast %cst : f32 to vector<1x3xf32>
    %6 = arith.addf %1, %5 : vector<1x3xf32>
    %7 = math.log %6 : vector<1x3xf32>
    %8 = arith.addf %4, %7 : vector<1x3xf32>
    %9 = vector.shape_cast %8 : vector<1x3xf32> to vector<1x1x3xf32>
    %cst_2 = arith.constant dense<0.000000e+00> : vector<1xf32>
    %10 = vector.multi_reduction <add>, %9, %cst_2 [1, 2] : vector<1x1x3xf32> to vector<1xf32>
    %11 = vector.shape_cast %10 : vector<1xf32> to vector<1x1x1xf32>
    %12 = vector.extract %11[0, 0, 0] : f32 from vector<1x1x1xf32>
    %c0_3 = arith.constant 0 : index
    %13 = memref.load %arg1[%c0_3] : memref<1xf32, #tpu.memory_space<smem>>
    memref.store %12, %arg1[%c0_3] : memref<1xf32, #tpu.memory_space<smem>>
    return
  }
}

</mosaic_0001>

<bundles_post_ra>
// kernel: tpu_custom_call.1
= control target key start
LH: loop header
LB: loop body
LE: loop exit
PB: predicated region body
PF: predicated region fallthrough
CT: control target
= control target key end

     0   :  { %6 = vsyncpa [#allocation3], 0  ;;  %s140_s0 = inlined_call_operand.hbm [shape: f32[2,3], index: 0, kind: input, shape index: {}]   ;;  %s141_s1 = inlined_call_operand.hbm [shape: f32[1], index: 1, kind: output, shape index: {}]  }
   0x1   :  { %7 = vsyncpa [#allocation4], 0  ;;  %s13_s8 = sshll.u32 %s140_s0, 4  ;;  %s122_s9 = smov [#allocation2]   ;;  %s14_s8 = int_to_ptr.hbm [resolvable:$true] %s13_s8 }
   0x2   :  { %s15_s10 = sshll.u32 %s122_s9, 4  ;;  %s16_s10 = int_to_ptr.vmem [resolvable:$true] %s15_s10 }
   0x3   :  { %18 = dma.hbm_to_vmem [thread:$0]  %s14_s8, 32, %s16_s10, [#allocation3]  }
   0x4   :  { %118 = dma.done.wait [#allocation3], 32  }
   0x5   :  { %119 = vsyncadd [#allocation3], 4294967264  ;;  %v24_v0 = vld [vmem:[#allocation2 + $0x1] sm:$0x1]  ;;  %v23_v12 = vld [vmem:[#allocation2] sm:$0x1] }
   0x6   :  { %v25_v1 = vmul.f32 %v24_v0, %v24_v0  ;;  %v41_v2 = vadd.f32 1.0, %v24_v0  ;;  %vm45_vm4 = vcmask 16384   ;;  %s63_s12 = sshll.u32 %s141_s1, 4  ;;  %s123_s14 = smov [#allocation5]   ;;  %s64_s12 = int_to_ptr.hbm [resolvable:$true] %s63_s12 }
   0x8   :  { %78 = vrcp.f32 %v25_v1  ;;  %v37_v5 = vand.u32 2147483648, %v25_v1  ;;  %vm31_vm0 = vweird.f32 %v25_v1  ;;  %v35_v7 = vand.u32 2147483647, %v25_v1 }
   0x9   :  { %80 = vlog2.f32 %v41_v2 }
   0xa   :  { %v38_v10 = vor.u32 1.1754944e-38, %v37_v5  ;;  %vm36_vm3 = vcmp.eq.f32.partialorder %v35_v7, 8.507059e+37 }
   0xe   :  { %v79_v3 = vpop.eup %78 }
   0xf   :  { %v27_v4 = vmul.f32 %v79_v3, %v25_v1  ;;  %vm32_vm1 = vweird.f32 %v79_v3  ;;  %v81_v9 = vpop.eup %80 }
  0x10   :  { %vm33_vm2 = vmor %vm31_vm0, %vm32_vm1  ;;  %v43_v14 = vmul.f32 0.6931472, %v81_v9 }
  0x11   :  { %v28_v6 = vsub.f32 1.0, %v27_v4 }
  0x13   :  { %v29_v8 = vmul.f32 %v79_v3, %v28_v6 }
  0x15   :  { %v30_v11 = vadd.f32 %v79_v3, %v29_v8 }
  0x17   :  { %v34_v13 = vsel %vm33_vm2, %v79_v3, %v30_v11 }
  0x18   :  { %v39_v15 = vsel %vm36_vm3, %v38_v10, %v34_v13 }
  0x19   :  { %v40_v16 = vmul.f32 %v39_v15, %v23_v12 }
  0x1b   :  { %v44_v17 = vadd.f32 %v43_v14, %v40_v16 }
  0x1d   :  { %v46_v18 = vsel %vm45_vm4, %v44_v17, 0.0 }
  0x1e   :  { %47 = vadd.xlane.f32.xlu0 %v46_v18 }
  0x91   :  { %v48_v19 = vpop.xlane.xlu0 %47 }
  0x92   :  { %v49_v20 = vrot.slane %v48_v19, 4 }
  0x94   :  { %v50_v21 = vadd.f32 %v49_v20, %v48_v19 }
  0x96   :  { %v51_v22 = vrot.slane %v50_v21, 2 }
  0x98   :  { %v52_v23 = vadd.f32 %v51_v22, %v50_v21 }
  0x9a   :  { %v53_v24 = vrot.slane %v52_v23, 1 }
  0x9c   :  { %v54_v25 = vadd.f32 %v53_v24, %v52_v23 }
  0x9e   :  { %74 = vpush %v54_v25 }
  0xcf   :  { %s75_s13 = spop %74 }
  0xd0   :  { %57 = sst [smem:[#allocation5]] %s75_s13 }
  0xd1   :  { %66 = dma.smem_to_hbm %s123_s14, 16, %s64_s12, [#allocation4]  }
  0xd2   :  { %120 = dma.done.wait [#allocation4], 16  }
  0xd3   :  { %121 = vsyncadd [#allocation4], 4294967280 }
  0xd4   :  { %71 = sfence }
  0xd5   :  { %72 = vsyncpa [#allocation3], 1 }
  0xd6   :  { %73 = vsyncpa [#allocation4], 1 }

</bundles_post_ra>
